<compile_context>
chip_gen: v7x
topology: tpu7x:2x2x1
jax: 0.10.0
libtpu: 0.0.40
codegen_flags: <defaults>
</compile_context>

<pallas_src>
import functools

import jax
import jax.numpy as jnp
from jax.experimental import pallas as pl
from jax.experimental.pallas import tpu as pltpu


def _round_up(x, m):
    return (x + m - 1) // m * m


def _edge_model_kernel(xT_ref, bidx_ref,
                       w1T_ref, b1_ref,
                       w2hT_ref, w2eT_ref, ugT_ref, b2_ref,
                       outT_ref, *, num_node_feats):
    cdt = xT_ref.dtype                       # compute/streaming dtype (bf16)

    # packed per-edge inputs, feature-major: rows [0:Nn) = src.T, [Nn:) = edge.T
    srcT = xT_ref[:num_node_feats, :]        # (Nn, tile) -- static slice, free
    edgeT = xT_ref[num_node_feats:, :]       # (Ne, tile)

    # edge_mlp_node: Linear + ReLU     h.T = relu(W1.T @ src.T + b1)
    hT = jnp.dot(w1T_ref[...], srcT,
                 preferred_element_type=jnp.float32) + b1_ref[...]
    hT = jnp.maximum(hT, 0.0).astype(cdt)    # (H, tile)

    # one_hot(batch) over graphs -> per-edge global contribution via tiny matmul
    num_graphs = ugT_ref.shape[1]
    tile = bidx_ref.shape[1]
    iota_b = jax.lax.broadcasted_iota(jnp.int32, (num_graphs, tile), 0)
    onehot = (iota_b == bidx_ref[...].astype(jnp.int32)).astype(cdt)  # (B, tile)

    # edge_mlp_all on cat([h, edge_attr, u[batch]]) == sum of partial matmuls
    oT = (jnp.dot(w2hT_ref[...], hT, preferred_element_type=jnp.float32)
          + jnp.dot(w2eT_ref[...], edgeT, preferred_element_type=jnp.float32)
          + jnp.dot(ugT_ref[...], onehot, preferred_element_type=jnp.float32)
          + b2_ref[...])
    # store directly in the caller dtype (f32): no bf16 rounding of the output
    outT_ref[...] = jnp.maximum(oT, 0.0).astype(outT_ref.dtype)


def edge_model_forward(src, dst, edge_attr, u, batch, params, *,
                       tile_e=32768, compute_dtype=jnp.bfloat16,
                       packed_edge_inputs=None):
    """src:(E,Nn)  dst:(E,Nn)  edge_attr:(E,Ne)  u:(B,Ng)  batch:(E,) int."""
    del dst  # unused by the reference forward pass
    E, Nn = src.shape
    Ne = edge_attr.shape[1]
    B = u.shape[0]
    H = params["w1"].shape[1]
    Dout = params["w2"].shape[1]
    out_dtype = src.dtype

    # ---- narrow batch-index stream (2 B/edge instead of 4) ----
    bidx_dtype = jnp.int16 if B <= 32767 else jnp.int32
    bidx_bytes = jnp.dtype(bidx_dtype).itemsize
    csize = jnp.dtype(compute_dtype).itemsize

    # ---- tile selection ----------------------------------------------------
    # Live-VMEM estimate per edge: double-buffered IO + in-body intermediates.
    per_edge_vmem = (2 * csize * (Nn + Ne)        # packed input x2 buffers
                     + 2 * bidx_bytes             # bidx        x2 buffers
                     + 2 * 4 * Dout               # f32 output  x2 buffers
                     + 4 * H + csize * H          # hT f32 + hT compute-dtype
                     + csize * B + 4 * Dout       # one-hot + f32 partial sums
                     + 32)                        # slack
    VMEM_BUDGET = 16 * 1024 * 1024                # <= half the 32 MiB scoped limit
    tile_cap = min(int(tile_e), VMEM_BUDGET // per_edge_vmem)
    tile_cap = max(128, tile_cap // 128 * 128)

    E_128 = _round_up(E, 128)
    if E_128 >= 4 * 128:
        # largest lane-multiple tile that still leaves >=4 grid steps
        # (>=2 per TensorCore on v7x so DMA prefetch/writeback stays hidden)
        tile = max(128, min(tile_cap, (E_128 // 4) // 128 * 128))
    else:
        tile = E_128                              # single tile for tiny E
    E_pad = _round_up(E, tile)                    # arbitrary E: pad, drop tail
    grid = (E_pad // tile,)

    # ---- wrapper-side layout plumbing (feature-major, packed, bf16) --------
    if packed_edge_inputs is None:
        # TODO(synk): extra HBM pass -- emit this slab upstream instead.
        packed_edge_inputs = jnp.concatenate(
            [src.astype(compute_dtype).T, edge_attr.astype(compute_dtype).T],
            axis=0)                                           # (Nn+Ne, E)
    x_packedT = jnp.pad(packed_edge_inputs, ((0, 0), (0, E_pad - E)))
    bidx = jnp.pad(batch.astype(bidx_dtype), (0, E_pad - E)).reshape(1, E_pad)

    w2 = params["w2"]                                         # (H+Ne+Ng, Dout)
    w2_h, w2_e, w2_g = w2[:H], w2[H:H + Ne], w2[H + Ne:]
    # fold the u[batch] gather: tiny (Dout, B) table instead of an (E, Ng) array
    ug_projT = (u @ w2_g).astype(compute_dtype).T             # (Dout, B)
    w1T = params["w1"].astype(compute_dtype).T                # (H, Nn)
    w2hT = w2_h.astype(compute_dtype).T                       # (Dout, H)
    w2eT = w2_e.astype(compute_dtype).T                       # (Dout, Ne)
    b1 = params["b1"].reshape(H, 1).astype(jnp.float32)       # (H, 1)
    b2 = params["b2"].reshape(Dout, 1).astype(jnp.float32)    # (Dout, 1)

    # ---- cost hint for XLA scheduling around the custom call ----------------
    weight_bytes = (w1T.size + w2hT.size + w2eT.size + ug_projT.size) * csize \
        + (H + Dout) * 4
    cost = pl.CostEstimate(
        flops=int(2 * E_pad * (Nn * H + H * Dout + Ne * Dout + B * Dout)),
        transcendentals=0,
        bytes_accessed=int(E_pad * ((Nn + Ne) * csize + bidx_bytes + Dout * 4)
                           + weight_bytes))

    full = lambda i: (0, 0)
    outT = pl.pallas_call(
        functools.partial(_edge_model_kernel, num_node_feats=Nn),
        out_shape=jax.ShapeDtypeStruct((Dout, E_pad), out_dtype),
        grid_spec=pltpu.PrefetchScalarGridSpec(
            num_scalar_prefetch=0,
            grid=grid,
            in_specs=[
                pl.BlockSpec((Nn + Ne, tile), lambda i: (0, i)),  # packed edges
                pl.BlockSpec((1, tile), lambda i: (0, i)),        # batch indices
                pl.BlockSpec((H, Nn), full),                      # W1.T (resident)
                pl.BlockSpec((H, 1), full),                       # b1
                pl.BlockSpec((Dout, H), full),                    # W2_h.T
                pl.BlockSpec((Dout, Ne), full),                   # W2_e.T
                pl.BlockSpec((Dout, B), full),                    # (u @ W2_g).T
                pl.BlockSpec((Dout, 1), full),                    # b2
            ],
            out_specs=pl.BlockSpec((Dout, tile), lambda i: (0, i)),
        ),
        compiler_params=pltpu.CompilerParams(
            dimension_semantics=("parallel",),
            vmem_limit_bytes=32 * 1024 * 1024),
        cost_estimate=cost,
    )(x_packedT, bidx, w1T, b1, w2hT, w2eT, ug_projT, b2)

    # strip padded tail, back to edge-major (output already in caller dtype)
    return outT[:, :E].T


def _reference(src, edge_attr, u, batch, params):
    """Plain-JAX f32 reference mirroring the PyTorch forward."""
    h = jnp.maximum(src @ params["w1"] + params["b1"], 0.0)
    cat = jnp.concatenate([h, edge_attr, u[batch]], axis=1)
    return jnp.maximum(cat @ params["w2"] + params["b2"], 0.0)


if __name__ == "__main__":
    # small, deterministic problem (E not a multiple of the tile -> tests tail,
    # and E_128 >= 512 -> exercises the multi-step grid path)
    num_node_feats = 8
    num_edge_feats = 4
    num_global_feats = 6
    hidden = 32
    out_feats = 4
    E = 1000         # number of edges
    B = 2            # number of graphs

    key = jax.random.PRNGKey(0)
    ks = jax.random.split(key, 9)

    src = jax.random.normal(ks[0], (E, num_node_feats), jnp.float32)
    dst = jax.random.normal(ks[1], (E, num_node_feats), jnp.float32)
    edge_attr = jax.random.normal(ks[2], (E, num_edge_feats), jnp.float32)
    u = jax.random.normal(ks[3], (B, num_global_feats), jnp.float32)
    batch = jax.random.randint(ks[4], (E,), 0, B, jnp.int32)

    num_inputs_all = hidden + num_edge_feats + num_global_feats
    params = {
        "w1": jax.random.normal(ks[5], (num_node_feats, hidden), jnp.float32) * 0.1,
        "b1": jax.random.normal(ks[6], (1, hidden), jnp.float32) * 0.1,
        "w2": jax.random.normal(ks[7], (num_inputs_all, out_feats), jnp.float32) * 0.1,
        "b2": jax.random.normal(ks[8], (1, out_feats), jnp.float32) * 0.1,
    }

    out = edge_model_forward(src, dst, edge_attr, u, batch, params)
    out = jax.block_until_ready(out)

    ref = _reference(src, edge_attr, u, batch, params)
    assert out.shape == (E, out_feats)
    assert out.dtype == ref.dtype
    # bf16 streamed activations/weights -> loose tolerance vs the f32 reference
    assert jnp.allclose(out, ref, atol=5e-2, rtol=5e-2)

    print("KERNEL_OK")
</pallas_src>

<mosaic_0001>
module attributes {stable_mosaic.version = 11 : i64} {
  func.func @_edge_model_kernel(%arg0: i32, %arg1: memref<12x256xbf16, #tpu.memory_space<vmem>>, %arg2: memref<1x256xi16, #tpu.memory_space<vmem>>, %arg3: memref<32x8xbf16, #tpu.memory_space<vmem>>, %arg4: memref<32x1xf32, #tpu.memory_space<vmem>>, %arg5: memref<4x32xbf16, #tpu.memory_space<vmem>>, %arg6: memref<4x4xbf16, #tpu.memory_space<vmem>>, %arg7: memref<4x2xbf16, #tpu.memory_space<vmem>>, %arg8: memref<4x1xf32, #tpu.memory_space<vmem>>, %arg9: memref<4x256xf32, #tpu.memory_space<vmem>>) attributes {dimension_semantics = [#tpu.dimension_semantics<parallel>], iteration_bounds = array<i64: 4>, scalar_prefetch = 0 : i64, scratch_operands = 0 : i64, tpu.core_type = #tpu.core_type<tc>, window_params = [{transform_indices = @transform_0, window_bounds = array<i64: 12, 256>}, {transform_indices = @transform_1, window_bounds = array<i64: 1, 256>}, {pipeline_mode = #tpu.pipeline_mode<synchronous>, transform_indices = @transform_2, window_bounds = array<i64: 32, 8>}, {pipeline_mode = #tpu.pipeline_mode<synchronous>, transform_indices = @transform_3, window_bounds = array<i64: 32, 1>}, {pipeline_mode = #tpu.pipeline_mode<synchronous>, transform_indices = @transform_4, window_bounds = array<i64: 4, 32>}, {pipeline_mode = #tpu.pipeline_mode<synchronous>, transform_indices = @transform_5, window_bounds = array<i64: 4, 4>}, {pipeline_mode = #tpu.pipeline_mode<synchronous>, transform_indices = @transform_6, window_bounds = array<i64: 4, 2>}, {pipeline_mode = #tpu.pipeline_mode<synchronous>, transform_indices = @transform_7, window_bounds = array<i64: 4, 1>}, {transform_indices = @transform_8, window_bounds = array<i64: 4, 256>}]} {
    %c0 = arith.constant 0 : index
    %c0_0 = arith.constant 0 : index
    %0 = vector.load %arg1[%c0, %c0_0] : memref<12x256xbf16, #tpu.memory_space<vmem>>, vector<8x256xbf16>
    %c8 = arith.constant 8 : index
    %c0_1 = arith.constant 0 : index
    %1 = vector.load %arg1[%c8, %c0_1] : memref<12x256xbf16, #tpu.memory_space<vmem>>, vector<4x256xbf16>
    %c0_2 = arith.constant 0 : index
    %c0_3 = arith.constant 0 : index
    %2 = vector.load %arg3[%c0_2, %c0_3] : memref<32x8xbf16, #tpu.memory_space<vmem>>, vector<32x8xbf16>
    %cst = arith.constant dense<0.000000e+00> : vector<32x256xf32>
    %3 = tpu.matmul %2, %0, %cst {dimension_numbers = #tpu.dot_dimension_numbers<[1], [0], [0], [1], [0, 0, 1, 1], [], []>} : vector<32x8xbf16>, vector<8x256xbf16>, vector<32x256xf32> -> vector<32x256xf32>
    %c0_4 = arith.constant 0 : index
    %c0_5 = arith.constant 0 : index
    %4 = vector.load %arg4[%c0_4, %c0_5] : memref<32x1xf32, #tpu.memory_space<vmem>>, vector<32x1xf32>
    %5 = vector.broadcast %4 : vector<32x1xf32> to vector<32x256xf32>
    %6 = arith.addf %3, %5 : vector<32x256xf32>
    %cst_6 = arith.constant 0.000000e+00 : f32
    %7 = vector.broadcast %cst_6 : f32 to vector<32x256xf32>
    %8 = arith.maximumf %6, %7 : vector<32x256xf32>
    %9 = arith.truncf %8 : vector<32x256xf32> to vector<32x256xbf16>
    %10 = tpu.iota {dimensions = array<i32: 0>} : vector<2x256xi32>
    %c0_7 = arith.constant 0 : index
    %c0_8 = arith.constant 0 : index
    %11 = vector.load %arg2[%c0_7, %c0_8] : memref<1x256xi16, #tpu.memory_space<vmem>>, vector<1x256xi16>
    %12 = arith.extsi %11 : vector<1x256xi16> to vector<1x256xi32>
    %13 = vector.broadcast %12 : vector<1x256xi32> to vector<2x256xi32>
    %14 = arith.cmpi eq, %10, %13 : vector<2x256xi32>
    %15 = arith.extui %14 : vector<2x256xi1> to vector<2x256xi32>
    %16 = arith.sitofp %15 : vector<2x256xi32> to vector<2x256xf32>
    %17 = arith.truncf %16 : vector<2x256xf32> to vector<2x256xbf16>
    %c0_9 = arith.constant 0 : index
    %c0_10 = arith.constant 0 : index
    %18 = vector.load %arg5[%c0_9, %c0_10] : memref<4x32xbf16, #tpu.memory_space<vmem>>, vector<4x32xbf16>
    %cst_11 = arith.constant dense<0.000000e+00> : vector<4x256xf32>
    %19 = tpu.matmul %18, %9, %cst_11 {dimension_numbers = #tpu.dot_dimension_numbers<[1], [0], [0], [1], [0, 0, 1, 1], [], []>} : vector<4x32xbf16>, vector<32x256xbf16>, vector<4x256xf32> -> vector<4x256xf32>
    %c0_12 = arith.constant 0 : index
    %c0_13 = arith.constant 0 : index
    %20 = vector.load %arg6[%c0_12, %c0_13] : memref<4x4xbf16, #tpu.memory_space<vmem>>, vector<4x4xbf16>
    %cst_14 = arith.constant dense<0.000000e+00> : vector<4x256xf32>
    %21 = tpu.matmul %20, %1, %cst_14 {dimension_numbers = #tpu.dot_dimension_numbers<[1], [0], [0], [1], [0, 0, 1, 1], [], []>} : vector<4x4xbf16>, vector<4x256xbf16>, vector<4x256xf32> -> vector<4x256xf32>
    %22 = arith.addf %19, %21 : vector<4x256xf32>
    %c0_15 = arith.constant 0 : index
    %c0_16 = arith.constant 0 : index
    %23 = vector.load %arg7[%c0_15, %c0_16] : memref<4x2xbf16, #tpu.memory_space<vmem>>, vector<4x2xbf16>
    %cst_17 = arith.constant dense<0.000000e+00> : vector<4x256xf32>
    %24 = tpu.matmul %23, %17, %cst_17 {dimension_numbers = #tpu.dot_dimension_numbers<[1], [0], [0], [1], [0, 0, 1, 1], [], []>} : vector<4x2xbf16>, vector<2x256xbf16>, vector<4x256xf32> -> vector<4x256xf32>
    %25 = arith.addf %22, %24 : vector<4x256xf32>
    %c0_18 = arith.constant 0 : index
    %c0_19 = arith.constant 0 : index
    %26 = vector.load %arg8[%c0_18, %c0_19] : memref<4x1xf32, #tpu.memory_space<vmem>>, vector<4x1xf32>
    %27 = vector.broadcast %26 : vector<4x1xf32> to vector<4x256xf32>
    %28 = arith.addf %25, %27 : vector<4x256xf32>
    %cst_20 = arith.constant 0.000000e+00 : f32
    %29 = vector.broadcast %cst_20 : f32 to vector<4x256xf32>
    %30 = arith.maximumf %28, %29 : vector<4x256xf32>
    %c0_21 = arith.constant 0 : index
    %c0_22 = arith.constant 0 : index
    %31 = vector.load %arg9[%c0_21, %c0_22] : memref<4x256xf32, #tpu.memory_space<vmem>>, vector<4x256xf32>
    tpu.vector_store %arg9[%c0_21, %c0_22], %30 {strides = array<i32>} : memref<4x256xf32, #tpu.memory_space<vmem>>, vector<4x256xf32>,
    return
  }
  func.func @transform_0(%arg0: i32) -> (i32, i32) {
    %c0_i32 = arith.constant 0 : i32
    %c0_i32_0 = arith.constant 0 : i32
    return %c0_i32, %arg0 : i32, i32
  }
  func.func @transform_1(%arg0: i32) -> (i32, i32) {
    %c0_i32 = arith.constant 0 : i32
    %c0_i32_0 = arith.constant 0 : i32
    return %c0_i32, %arg0 : i32, i32
  }
  func.func @transform_2(%arg0: i32) -> (i32, i32) {
    %c0_i32 = arith.constant 0 : i32
    %c0_i32_0 = arith.constant 0 : i32
    %c0_i32_1 = arith.constant 0 : i32
    return %c0_i32, %c0_i32_0 : i32, i32
  }
  func.func @transform_3(%arg0: i32) -> (i32, i32) {
    %c0_i32 = arith.constant 0 : i32
    %c0_i32_0 = arith.constant 0 : i32
    %c0_i32_1 = arith.constant 0 : i32
    return %c0_i32, %c0_i32_0 : i32, i32
  }
  func.func @transform_4(%arg0: i32) -> (i32, i32) {
    %c0_i32 = arith.constant 0 : i32
    %c0_i32_0 = arith.constant 0 : i32
    %c0_i32_1 = arith.constant 0 : i32
    return %c0_i32, %c0_i32_0 : i32, i32
  }
  func.func @transform_5(%arg0: i32) -> (i32, i32) {
    %c0_i32 = arith.constant 0 : i32
    %c0_i32_0 = arith.constant 0 : i32
    %c0_i32_1 = arith.constant 0 : i32
    return %c0_i32, %c0_i32_0 : i32, i32
  }
  func.func @transform_6(%arg0: i32) -> (i32, i32) {
    %c0_i32 = arith.constant 0 : i32
    %c0_i32_0 = arith.constant 0 : i32
    %c0_i32_1 = arith.constant 0 : i32
    return %c0_i32, %c0_i32_0 : i32, i32
  }
  func.func @transform_7(%arg0: i32) -> (i32, i32) {
    %c0_i32 = arith.constant 0 : i32
    %c0_i32_0 = arith.constant 0 : i32
    %c0_i32_1 = arith.constant 0 : i32
    return %c0_i32, %c0_i32_0 : i32, i32
  }
  func.func @transform_8(%arg0: i32) -> (i32, i32) {
    %c0_i32 = arith.constant 0 : i32
    %c0_i32_0 = arith.constant 0 : i32
    return %c0_i32, %arg0 : i32, i32
  }
}

</mosaic_0001>

<bundles_post_ra>
// kernel: tpu_custom_call.1
= control target key start
LH: loop header
LB: loop body
LE: loop exit
PB: predicated region body
PF: predicated region fallthrough
CT: control target
= control target key end

     0   :  { %13 = vsyncpa [#allocation3], 0  ;;  %s1207_s0 = inlined_call_operand.hbm [shape: bf16[12,1024], index: 0, kind: input, shape index: {}]   ;;  %s1208_s1 = inlined_call_operand.vmem [shape: s16[1,1024], index: 1, kind: input, shape index: {}]   ;;  %s1209_s2 = inlined_call_operand.vmem [shape: bf16[32,8], index: 2, kind: input, shape index: {}]   ;;  %s1210_s3 = inlined_call_operand.vmem [shape: f32[32,1], index: 3, kind: input, shape index: {}]   ;;  %s1211_s4 = inlined_call_operand.vmem [shape: bf16[4,32], index: 4, kind: input, shape index: {}]   ;;  %s1212_s5 = inlined_call_operand.vmem [shape: bf16[4,4], index: 5, kind: input, shape index: {}]   ;;  %s1213_s6 = inlined_call_operand.vmem [shape: bf16[4,2], index: 6, kind: input, shape index: {}]   ;;  %s1214_s7 = inlined_call_operand.vmem [shape: f32[4,1], index: 7, kind: input, shape index: {}]   ;;  %s1215_s8 = inlined_call_operand.hbm [shape: f32[4,1024], index: 8, kind: output, shape index: {}]  }
   0x1   :  { %15 = vsyncpa [#allocation3 + $0x1], 0 }
   0x2   :  { %16 = vsyncpa [#allocation4], 0 }
   0x3   :  { %18 = vsyncpa [#allocation4 + $0x1], 0  ;;  %s1008_s27 = smov 0   ;;  %s1010_s28 = smov 0  }
   0x4   :  { %s1012_s29 = smov 0   ;;  %s1014_s30 = smov 0  }
   0x5 LB: > { %s1029_s9 = sadd.s32 4294967295, %s954_s30   ;;  %s766_s10 = sadd.s32 4294967294, %s954_s30   ;;  %s954_s30 = sphi %s1014_s30, %s1228_s30   ;;  %s950_s29 = sphi %s1012_s29, %s1227_s29   ;;  %s946_s28 = sphi %s1010_s28, %s1226_s28   ;;  %s942_s27 = sphi %s1008_s27, %s1225_s27  }
   0x6   : > { %s1033_s11 = sadd.s32 1, %s954_s30   ;;  %s31_s12 = sadd.s32 1, %s950_s29 }
   0x7   : > { %s28_s13 = ssub.s32 %s954_s30, %s1033_s11  ;;  %p38_p0 = scmp.ne.s32.totalorder %s950_s29, %s946_s28 }
   0x8   : > { %p29_p1 = scmp.eq.s32.totalorder %s28_s13, 0  ;;  %p39_p2 = scmp.eq.s32.totalorder %s954_s30, 0 }
   0x9   : > { %p44_p3 = scmp.ne.s32.totalorder %s946_s28, %s942_s27  ;;  %p45_p4 = scmp.eq.s32.totalorder %s1029_s9, 0 }
   0xa   : > { %s1045_s14 = scalar_select %p29_p1, %s950_s29, %s31_s12  }
   0xb   : > { %p1047_p5 = por %p39_p2, %p38_p0  ;;  %p1051_p6 = por %p45_p4, %p44_p3 }
   0xc   : > { %p220_p7 = scmp.eq.s32.totalorder %s1029_s9, 3  ;;  %p226_p8 = scmp.eq.s32.totalorder %s766_s10, 3 }
   0xd   : > { %p811_p9 = scmp.lt.s32.totalorder %s954_s30, 4  ;;  %s264_s19 = sand.u32 1, %s950_s29  }
   0xe   : > { %p1057_p10 = por %p220_p7, %p38_p0  ;;  %p1061_p11 = por %p226_p8, %p44_p3 }
   0xf   : > { %s797_s20 = sshll.u32 %s954_s30, 7  ;;  %s769_s21 = sshll.u32 %s264_s19, 4 }
  0x10   : > { %s1219_s17 = scalar_select %p1057_p10, 1, 0 }
  0x11   : > { %s1220_s18 = scalar_select %p1061_p11, 1, 0 }
  0x12   : > { %s1070_s24 = scalar_lea.hbm %s1207_s0, %s797_s20  ;;  %s268_s25 = scalar_lea.vmem [#allocation2], %s769_s21 }
  0x13   : > { %s275_s26 = sshll.u32 %s268_s25, 4  ;;  %p1074_p12 = pnand %p811_p9, %p1047_p5  ;;  %s1078_s26 = int_to_ptr.vmem [resolvable:$true] %s275_s26 }
  0x14   : > { %s1081_s12 = scalar_lea.sflag [#allocation3], %s264_s19  ;;  %s858_s13 = scalar_lea.hbm %s1070_s24, 256 }
  0x15   : > { %p859_p0 = scmp.ne.s32.totalorder %s1070_s24, %s858_s13  ;;  %p860_p1 = pneg %p1074_p12 }
  0x16   : > { %s863_s21 = scalar_lea.hbm %s1207_s0, 1024  ;;  %p864_p4 = scmp.lt.u32.totalorder %s1070_s24, %s1207_s0 }
  0x17   : > { %p861_p2 = pnand %p860_p1, %p859_p0  ;;  %p865_p5 = scmp.lt.u32.totalorder %s863_s21, %s858_s13 }
  0x18   : > { %p867_p8 = scmp.lt.u32.totalorder %s858_s13, %s1070_s24 }
  0x19   : > { %p862_p3 = pneg %p861_p2  ;;  %p866_p7 = por %p865_p5, %p864_p4 }
  0x1b   : > { %p868_p9 = por %p867_p8, %p866_p7 }
  0x1d   : > { %p869_p13 = pnand %p868_p9, %p862_p3 }
  0x1f   : > { %872 = shalt.err (!%p869_p13)
}
  0x20   : > { %s873_s19 = scalar_lea.vmem %s1078_s26, 256  ;;  %s956_s25 = smov [#allocation2]  }
  0x21   : > { %p874_p0 = scmp.ne.s32.totalorder %s1078_s26, %s873_s19  ;;  %s878_s15 = sshll.u32 %s956_s25, 4  ;;  %s879_s15 = int_to_ptr.vmem [resolvable:$false] %s878_s15 }
  0x22   : > { %s880_s20 = scalar_lea.vmem %s879_s15, 512  ;;  %p881_p10 = scmp.lt.s32.totalorder %s1078_s26, %s879_s15 }
  0x23   : > { %p876_p2 = pnand %p874_p0, %p860_p1  ;;  %p882_p4 = scmp.lt.s32.totalorder %s880_s20, %s873_s19 }
  0x25   : > { %p877_p11 = pneg %p876_p2  ;;  %p883_p5 = por %p882_p4, %p881_p10 }
  0x27   : > { %p884_p7 = pnand %p883_p5, %p877_p11 }
  0x29   : > { %887 = shalt.err (!%p884_p7)
}
  0x2a   : > { %s957_s13 = smov 512   ;;  %s958_s21 = smov 128  }
  0x2b   : > { %s959_s22 = smov 8   ;;  %p291_p13 = scmp.lt.s32.totalorder %s954_s30, 5 }
  0x2c   : > { %806 = dma.hbm_to_vmem [thread:$0]  (!%p1074_p12), %s1070_s24, 256, %s1078_s26, %s1081_s12, %s957_s13, %s958_s21, %s959_s22  }
  0x2d   : > { %p1222_p1 = scmp.ge.s32.totalorder %s954_s30, 1 }
  0x2f   : > { %p292_p3 = pnand %p1222_p1, %p291_p13 }
  0x30   : > { %s1113_s23 = sand.u32 (!%p292_p3), 1, %s946_s28  }
  0x31   : > { %295 = sbr.rel (%p292_p3) target bundleno = 534 (0x216), region = 52  ;;  %s773_s19 = sshll.u32 (!%p292_p3), %s1113_s23, 4 }
  0x32   : > { %s298_s25 = scalar_lea.sflag (!%p292_p3), [#allocation3], %s1113_s23  ;;  %s1117_s15 = scalar_lea.vmem (!%p292_p3), [#allocation2], %s773_s19 }
  0x38   : > { %933 = dma.done.wait (%p1051_p6), %s298_s25, 256  }
  0x39   : > { %935 = vsyncadd (%p1051_p6), %s298_s25, 4294967040  ;;  %v960_v0 = vmov 0   ;;  %v346_v1 = vld [vmem:[%s1117_s15] sm:$0xff]  ;;  %vm398_vm0 = vcmask 1043456   ;;  %vm391_vm1 = vcmask 64512   ;;  %v353_v8 = vld [vmem:[%s1210_s3 + $0x8] sm:$0xff]  ;;  %v470_v13 = vlaneseq }
  0x3a   : > { %437 = vmatprep.mubr.bf16.mxu0 %v960_v0  ;;  %850 = vset.pattern.permute.xlu0 %v960_v0  ;;  %v779_v2 = vcombine.high %v346_v1, %v346_v1  ;;  %v778_v3 = vcombine.low %v346_v1, %v346_v1  ;;  %v352_v4 = vld [vmem:[%s1210_s3] sm:$0xff]  ;;  %v354_v7 = vld [vmem:[%s1210_s3 + $0x10] sm:$0xff]  ;;  %v355_v9 = vld [vmem:[%s1210_s3 + $0x18] sm:$0xff]  ;;  %s775_s12 = sshll.u32 %s1029_s9, 1  ;;  %vm509_vm2 = vcmask 1041408   ;;  %vm505_vm3 = vcmask 31744  }
  0x3b   : > { %851 = vset.pattern.permute.xlu1 %v960_v0  ;;  %548 = vmatprep.mubr.bf16.mxu1 %v960_v0  ;;  %v854_v6 = vld [vmem:[%s1209_s2] sm:$0xff]   ;;  %v855_v11 = vld [vmem:[%s1209_s2 + $0x8] sm:$0xff]   ;;  %p340_p6 = scmp.lt.s32.totalorder %s775_s12, 7  ;;  %v471_v16 = vshrl.u32 %v470_v13, 7  ;;  %v961_v27 = vmov 0.0   ;;  %vm607_vm6 = vcmask 1040384  }
  0x3c   : > { %780 = vmatprep.subr.msk.bf16.mxu0 %vm398_vm0, %v779_v2  ;;  %v400_v5 = vsel %vm398_vm0, %v778_v3, 0  ;;  %358 = vperm.xlu0 %850, %v352_v4   ;;  %v657_v10 = vld [vmem:[%s1214_s7] sm:$0xf]  ;;  %v347_v12 = vld [vmem:[%s1117_s15 + $0x8] sm:$0x33]  ;;  %vm603_vm7 = vcmask 15360  }
  0x3d   : > { %406 = vmatpush1.bf16.msra.mxu0 %v400_v5  ;;  %368 = vperm.xlu1 %851, %v354_v7   ;;  %s1230_s12 = smov (!%p340_p6, %s775_s12), 7  ;;  %v786_v14 = vcombine.high %v347_v12, %v347_v12  ;;  %v785_v15 = vcombine.low %v347_v12, %v347_v12  ;;  %v476_v20 = vsub.s32 0, %v471_v16  ;;  %v480_v21 = vsub.s32 2, %v471_v16  ;;  %v499_v24 = vld [vmem:[%s1212_s5] sm:$0x3]  ;;  %s774_s26 = sshll.u32 %s1113_s23, 3 }
  0x3e   : > { %s342_s13 = scalar_lea.vmem %s1208_s1, %s1230_s12  ;;  %v602_v33 = vld [vmem:[%s1213_s6] sm:$0x3]  ;;  %vm557_vm8 = vcmask 261120   ;;  %s798_s10 = sshll.u32 %s1029_s9, 7 }
  0x3f   : > { %787 = vmatprep.subr.msk.bf16.mxu1 %vm509_vm2, %v786_v14  ;;  %v511_v17 = vsel %vm509_vm2, %v785_v15, 0  ;;  %v472_v18 = vld [vmem:[%s342_s13] sm:$0x3]  ;;  %s337_s12 = scalar_lea.vmem [#allocation5], %s774_s26  ;;  %s1164_s15 = scalar_lea.hbm %s1215_s8, %s798_s10 }
  0x40   : > { %781 = vmatmul.mubr.msk.bf16.vlgmr.msra.gmra.mrb[0].mxu0 %vm391_vm1, %v854_v6  ;;  %363 = vperm.xlu0 %850, %v353_v8   ;;  %v473_v19 = vunpack.c.l.b16 %v472_v18  ;;  %v498_v2 = vld [vmem:[%s1211_s4] sm:$0x3]  ;;  %s687_s16 = sshll.u32 %s337_s12, 4  ;;  %s673_s21 = scalar_lea.sflag [#allocation4], %s1113_s23  ;;  %s1166_s16 = int_to_ptr.vmem [resolvable:$true] %s687_s16 }
  0x41   : > { %447 = vmatprep.mubr.bf16.mxu0 %v960_v0  ;;  %373 = vperm.xlu1 %851, %v355_v9   ;;  %s888_s22 = scalar_lea.vmem %s1166_s16, 128  ;;  %p1223_p11 = scmp.ne.s32.totalorder %s1219_s17, 0 }
  0x42   : > { %517 = vmatpush1.bf16.msra.mxu1 %v511_v17  ;;  %v481_v22 = vrot.slane %v473_v19, %v480_v21  ;;  %v477_v23 = vrot.slane %v473_v19, %v476_v20  ;;  %p889_p10 = scmp.ne.s32.totalorder %s1166_s16, %s888_s22  ;;  %s962_s9 = smov [#allocation5]  }
  0x43   : > { %s892_s19 = sshll.u32 %s962_s9, 4  ;;  %s893_s19 = int_to_ptr.vmem [resolvable:$false] %s892_s19 }
  0x44   : > { %660 = vperm.xlu0 %850, %v657_v10   ;;  %v489_v25 = vrot.slane %v481_v22, %v476_v20  ;;  %v485_v26 = vrot.slane %v477_v23, %v476_v20  ;;  %p890_p12 = pnand %p889_p10, %p1223_p11  ;;  %s894_s25 = scalar_lea.vmem %s893_s19, 256 }
  0x45   : > { %788 = vmatmul.mubr.msk.bf16.vlgmr.msra.gmra.mrb[0].mxu1 %vm505_vm3, %v499_v24  ;;  %p895_p9 = scmp.lt.s32.totalorder %s1166_s16, %s893_s19  ;;  %p896_p0 = scmp.lt.s32.totalorder %s894_s25, %s888_s22 }
  0x46   : > { %593 = vmatprep.mubr.bf16.mxu1 %v960_v0  ;;  %vm491_vm4 = vcmp.eq.s32.totalorder %v471_v16, %v489_v25  ;;  %vm490_vm5 = vcmp.eq.s32.totalorder %v471_v16, %v485_v26  ;;  %p891_p8 = pneg %p890_p12 }
  0x47   : > { %v784_v28 = vsel %vm491_vm4, 1.0, %v961_v27  ;;  %v783_v29 = vsel %vm490_vm5, 1.0, %v961_v27  ;;  %p897_p2 = por %p896_p0, %p895_p9 }
  0x48   : > { %782 = vmatmul.mubr.msk.bf16.gmra.mrb[4].mxu0 %vm391_vm1, %v855_v11  ;;  %v497_v30 = vpack.c.bf16 %v784_v28, %v784_v28  ;;  %v496_v31 = vpack.c.bf16 %v783_v29, %v783_v29 }
  0x49   : > { %646 = vmatprep.mubr.bf16.mxu0 %v960_v0  ;;  %p898_p4 = pnand %p897_p2, %p891_p8 }
  0x4a   : > { %790 = vmatprep.subr.msk.bf16.mxu0 %vm607_vm6, %v497_v30  ;;  %v609_v32 = vsel %vm607_vm6, %v496_v31, 0 }
  0x4b   : > { %615 = vmatpush1.bf16.msra.mxu0 %v609_v32 }
  0x50   : > { %791 = vmatmul.mubr.msk.bf16.vlgmr.msra.gmra.mrb[8].mxu0 %vm603_vm7, %v602_v33 }
  0xbb   : > { %v359_v34 = vpop.permute.xlu0 %358 }
  0xbc   : > { %v369_v43 = vpop.permute.xlu1 %368 }
  0xbf   : > { %v364_v38 = vpop.permute.xlu0 %363 }
  0xc0   : > { %v374_v54 = vpop.permute.xlu1 %373 }
  0xc3   : > { %v661_v18 = vpop.permute.xlu0 %660 }
 0x113   : > { %v439_v35 = vpop.f32.mrb[0].mxu0 }
 0x114   : > { %v440_v36 = vadd.f32 %v439_v35, %v359_v34  ;;  %v441_v37 = vpop.f32.mrb[1].mxu0 }
 0x115   : > { %v442_v39 = vadd.f32 %v441_v37, %v359_v34  ;;  %v443_v40 = vpop.f32.mrb[2].mxu0 }
 0x116   : > { %v444_v41 = vadd.f32 %v443_v40, %v364_v38  ;;  %v445_v42 = vpop.f32.mrb[3].mxu0  ;;  %v458_v45 = vmax.f32 %v440_v36, 0.0 }
 0x117   : > { %v446_v44 = vadd.f32 %v445_v42, %v364_v38  ;;  %v459_v47 = vmax.f32 %v442_v39, 0.0 }
 0x118   : > { %v460_v46 = vmax.f32 %v444_v41, 0.0  ;;  %v550_v3 = vpop.f32.mrb[0].mxu1 }
 0x119   : > { %v461_v48 = vmax.f32 %v446_v44, 0.0  ;;  %v552_v4 = vpop.f32.mrb[1].mxu1 }
 0x11a   : > { %v466_v49 = vpack.c.bf16 %v460_v46, %v458_v45  ;;  %v554_v5 = vpop.f32.mrb[2].mxu1 }
 0x11b   : > { %v467_v50 = vpack.c.bf16 %v461_v48, %v459_v47  ;;  %v449_v51 = vpop.f32.mrb[4].mxu0  ;;  %v555_v6 = vpop.f32.mrb[3].mxu1 }
 0x11c   : > { %v450_v52 = vadd.f32 %v449_v51, %v369_v43  ;;  %v451_v53 = vpop.f32.mrb[5].mxu0 }
 0x11d   : > { %v452_v55 = vadd.f32 %v451_v53, %v369_v43  ;;  %v453_v56 = vpop.f32.mrb[6].mxu0  ;;  %561 = vmatprep.subr.bf16.mxu1 %v467_v50 }
 0x11e   : > { %v454_v57 = vadd.f32 %v453_v56, %v374_v54  ;;  %v455_v58 = vpop.f32.mrb[7].mxu0  ;;  %562 = vmatpush1.bf16.msra.mxu1 %v466_v49  ;;  %v462_v60 = vmax.f32 %v450_v52, 0.0 }
 0x11f   : > { %v456_v59 = vadd.f32 %v455_v58, %v374_v54  ;;  %v463_v62 = vmax.f32 %v452_v55, 0.0 }
 0x120   : > { %v464_v61 = vmax.f32 %v454_v57, 0.0 }
 0x121   : > { %v465_v63 = vmax.f32 %v456_v59, 0.0 }
 0x122   : > { %v468_v0 = vpack.c.bf16 %v464_v61, %v462_v60 }
 0x123   : > { %v469_v1 = vpack.c.bf16 %v465_v63, %v463_v62  ;;  %v648_v7 = vpop.f32.mrb[8].mxu0 }
 0x124   : > { %v650_v8 = vpop.f32.mrb[9].mxu0 }
 0x125   : > { %563 = vmatprep.subr.bf16.mxu1 %v469_v1  ;;  %v652_v9 = vpop.f32.mrb[10].mxu0 }
 0x126   : > { %564 = vmatpush1.bf16.msra.mxu1 %v468_v0  ;;  %v653_v10 = vpop.f32.mrb[11].mxu0 }
 0x129   : > { %789 = vmatmul.mubr.msk.bf16.vlgmr.msra.gmra.mrb[4].mxu1 %vm557_vm8, %v498_v2 }
 0x1fc   : > { %v595_v11 = vpop.f32.mrb[4].mxu1 }
 0x1fd   : > { %v596_v12 = vadd.f32 %v595_v11, %v550_v3  ;;  %v597_v13 = vpop.f32.mrb[5].mxu1 }
 0x1fe   : > { %v598_v14 = vadd.f32 %v597_v13, %v552_v4  ;;  %v599_v15 = vpop.f32.mrb[6].mxu1 }
 0x1ff   : > { %v655_v16 = vadd.f32 %v648_v7, %v596_v12  ;;  %v600_v17 = vpop.f32.mrb[7].mxu1 }
 0x200   : > { %v656_v19 = vadd.f32 %v650_v8, %v598_v14 }
 0x201   : > { %v663_v20 = vadd.f32 %v661_v18, %v655_v16 }
 0x202   : > { %v664_v21 = vadd.f32 %v661_v18, %v656_v19 }
 0x203   : > { %v665_v22 = vmax.f32 %v663_v20, 0.0 }
 0x204   : > { %v666_v23 = vmax.f32 %v664_v21, 0.0 }
 0x206   : > { %v669_v24 = vcombine.low %v665_v22, %v666_v23 }
 0x208   : > { %671 = vst [vmem:[%s337_s12] sm:$0xff] %v669_v24 }
 0x209   : > { %901 = shalt.err (!%p898_p4)
}
 0x20a   : > { %s902_s23 = scalar_lea.hbm %s1164_s15, 128  ;;  %s906_s10 = scalar_lea.hbm %s1215_s8, 512 }
 0x20b   : > { %p903_p5 = scmp.ne.s32.totalorder %s1164_s15, %s902_s23  ;;  %p907_p1 = scmp.lt.u32.totalorder %s1164_s15, %s1215_s8 }
 0x20c   : > { %p908_p3 = scmp.lt.u32.totalorder %s906_s10, %s902_s23  ;;  %p910_p10 = scmp.lt.u32.totalorder %s902_s23, %s1164_s15 }
 0x20d   : > { %p904_p7 = pnand %p903_p5, %p1223_p11 }
 0x20e   : > { %p909_p6 = por %p908_p3, %p907_p1 }
 0x20f   : > { %p905_p13 = pneg %p904_p7 }
 0x210   : > { %p911_p12 = por %p910_p10, %p909_p6 }
 0x212   : > { %p912_p8 = pnand %p911_p12, %p905_p13 }
 0x214   : > { %915 = shalt.err (!%p912_p8)
}
 0x215   : > { %801 = dma.vmem_to_hbm [thread:$0]  (%p1223_p11), %s1166_s16, 128, %s1164_s15, %s673_s21  }
 0x216 PF: > { %p812_p9 = scmp.ge.s32.totalorder %s954_s30, 2  ;;  %s699_s13 = sand.u32 1, %s942_s27  }
 0x217   : > { %p1224_p0 = scmp.ne.s32.totalorder %s1220_s18, 0  ;;  %s700_s22 = scalar_lea.sflag [#allocation4], %s699_s13 }
 0x219   : > { %p808_p2 = pnand %p812_p9, %p1224_p0 }
 0x21b   : > { %937 = dma.done.wait (!%p808_p2), %s700_s22, 128  }
 0x21c   : > { %939 = vsyncadd (!%p808_p2), %s700_s22, 4294967168  ;;  %p21_p4 = scmp.ge.s32.totalorder %s1033_s11, 6   ;;  %s1225_s27 = smov %s946_s28 }
 0x21d   : > { %s1226_s28 = smov %s950_s29  ;;  %s1227_s29 = smov %s1045_s14 }
 0x21e   : > { %s1228_s30 = smov %s1033_s11  ;;  %23 = sbr.rel (!%p21_p4) target bundleno = 5 (0x5), region = 100 }
 0x225   :  { %705 = vsyncpa [#allocation3], 1 }
 0x226   :  { %707 = vsyncpa [#allocation3 + $0x1], 1 }
 0x227   :  { %708 = vsyncpa [#allocation4], 1 }
 0x228   :  { %710 = vsyncpa [#allocation4 + $0x1], 1 }

</bundles_post_ra>
